<compile_context>
chip_gen: v7x
topology: tpu7x:2x2x1
jax: 0.10.0
libtpu: 0.0.40
codegen_flags: <defaults>
</compile_context>

<pallas_src>
import functools

import jax
import jax.numpy as jnp
from jax.experimental import pallas as pl
from jax.experimental.pallas import tpu as pltpu


_LANE = 128


def _round_up(x, m):
    return (x + m - 1) // m * m


def _pad2(a, rows, cols):
    return jnp.pad(a, ((0, rows - a.shape[0]), (0, cols - a.shape[1])))


def _vmem_limits():
    """Generation-aware scoped-VMEM limit + per-call tile budget."""
    cap = None
    try:
        cap = getattr(pltpu.get_tpu_info(), "vmem_capacity_bytes", None)
    except Exception:
        cap = None
    if not cap:
        cap = 64 * 1024 * 1024           # conservative fallback (v7x per-TC size)
    limit = min(cap * 3 // 4, 100 * 1024 * 1024)   # 96 MiB on v5e/v6e, 48 MiB on v7x
    budget = limit * 2 // 3                        # 64 MiB on v5e/v6e, 32 MiB on v7x
    return int(limit), int(budget)


def _largest_tile(n_pad, cap_rows, *, min_steps=1):
    """Largest multiple of 128 dividing n_pad, <= cap_rows, leaving >= min_steps
    grid steps (megacore sharding) whenever n_pad allows it."""
    cap = min(cap_rows, n_pad)
    if min_steps > 1 and n_pad >= min_steps * _LANE:
        cap = min(cap, n_pad // min_steps)
    tm = max(_LANE, cap // _LANE * _LANE)
    while n_pad % tm:                    # n_pad is a multiple of 128, so this terminates
        tm -= _LANE
    return tm


def _choose_attn_tile(n_pad, fo, budget_bytes):
    """Dst-row tile for kernel B, accounting for resident blocks, double-buffered
    adjacency/output tiles and ~3 live (TM, N) f32 temporaries."""
    resident = n_pad * fo * 2 + n_pad * 4 + fo * 4           # z bf16 + el row + bias
    per_row = n_pad * (2 * 1 + 3 * 4) + fo * (2 * 4) + 8     # 2x int8 adj + 3 f32 temps + 2x f32 out + er
    avail = max(budget_bytes - resident, per_row * _LANE)
    return _largest_tile(n_pad, avail // per_row, min_steps=2)


# --------------------------------------------------------------------------- #
# Kernel A: projection + per-node attention scalars (tiled over node rows)
# --------------------------------------------------------------------------- #
def _gat_proj_kernel(x_ref, w_ref, al_ref, ar_ref, z_ref, el_ref, er_ref, *,
                     apply_input_elu):
    x = x_ref[...]
    if apply_input_elu:
        # F.elu between layer1 and layer2, fused into layer2's projection.
        x = jnp.where(x > 0, x, jnp.expm1(x))

    # z = x @ W on the MXU: bf16 inputs, f32 accumulate.
    z = jnp.dot(x.astype(jnp.bfloat16), w_ref[...],
                preferred_element_type=jnp.float32)            # (TM, Fo) f32

    # Per-node attention scalars from the f32 accumulate (columns; the wrapper
    # reshapes el to a lane-major (1, N) row before the attention kernel).
    el_ref[...] = jnp.sum(z * al_ref[...], axis=-1, keepdims=True)
    er_ref[...] = jnp.sum(z * ar_ref[...], axis=-1, keepdims=True)

    # z is stored bf16 end-to-end: the aggregation matmul consumes bf16 anyway,
    # so this halves z HBM writeback/re-read and its VMEM residency.
    z_ref[...] = z.astype(jnp.bfloat16)


# --------------------------------------------------------------------------- #
# Kernel B: masked softmax over incoming edges + aggregation (tiled over dst)
# --------------------------------------------------------------------------- #
def _gat_attn_kernel(z_ref, el_ref, er_ref, b_ref, adj_ref, out_ref):
    # int8 adjacency compared directly -> bool mask (no int8->f32 convert).
    mask = adj_ref[...] > 0                                    # (TM, N)

    # e[dst, src] = leaky_relu(er[dst] + el[src], 0.2); maximum-form saves a select.
    e = er_ref[...] + el_ref[...]                              # (TM,1)+(1,N)
    e = jnp.maximum(e, 0.2 * e)
    e = jnp.where(mask, e, jnp.float32(-1e30))

    # Masked softmax over src (== DGL edge_softmax), normalization deferred.
    m = jnp.max(e, axis=-1, keepdims=True)                     # (TM, 1)
    # Keep the post-exp re-mask: zero in-degree rows must stay all-zero (-> bias).
    p = jnp.where(mask, jnp.exp(e - m), 0.0)                   # (TM, N)
    s = jnp.sum(p, axis=-1, keepdims=True)                     # (TM, 1)

    # Aggregate unnormalized messages on the MXU (bf16 in, f32 accumulate),
    # then scale by 1/s on the EUP reciprocal path (deferred normalization).
    acc = jnp.dot(p.astype(jnp.bfloat16), z_ref[...],
                  preferred_element_type=jnp.float32)          # (TM, Fo)
    inv = pl.reciprocal(jnp.maximum(s, 1e-9), approx=True)     # zero in-degree -> bias row
    out_ref[...] = acc * inv + b_ref[...]


# --------------------------------------------------------------------------- #
# One single-head GATConv layer = projection call + attention call
# --------------------------------------------------------------------------- #
def gat_conv(x_pad, adj_i8, w_bf16, al, ar, bias, *, apply_input_elu,
             single_buffer_constants=True):
    """x_pad: (N_pad, Fi_pad) f32; adj_i8: (N_pad, N_pad) int8;
    w_bf16: (Fi_pad, Fo_pad) bf16; al, ar, bias: (1, Fo_pad) f32.
    Returns (N_pad, Fo_pad) f32."""
    n_pad, fi = x_pad.shape
    fo = w_bf16.shape[1]
    vmem_limit, tile_budget = _vmem_limits()
    cparams = pltpu.CompilerParams(
        dimension_semantics=("parallel",),
        vmem_limit_bytes=vmem_limit)

    def const_spec(shape):
        # Grid-invariant block: single-buffer it (double-buffering wastes VMEM).
        kwargs = {}
        if single_buffer_constants:
            kwargs["pipeline_mode"] = pl.Buffered(1)
        return pl.BlockSpec(shape, lambda t: (0, 0), **kwargs)

    # ---- projection: z (bf16), el, er ; own large row tile ------------------
    tm_p = _largest_tile(n_pad, 2048, min_steps=2)
    z, el_col, er = pl.pallas_call(
        functools.partial(_gat_proj_kernel, apply_input_elu=apply_input_elu),
        grid=(n_pad // tm_p,),
        in_specs=[
            pl.BlockSpec((tm_p, fi), lambda t: (t, 0)),   # x tile
            const_spec((fi, fo)),                         # W (resident)
            const_spec((1, fo)),                          # attn_l
            const_spec((1, fo)),                          # attn_r
        ],
        out_specs=[
            pl.BlockSpec((tm_p, fo), lambda t: (t, 0)),   # z (bf16)
            pl.BlockSpec((tm_p, 1), lambda t: (t, 0)),    # el column
            pl.BlockSpec((tm_p, 1), lambda t: (t, 0)),    # er column
        ],
        out_shape=[
            jax.ShapeDtypeStruct((n_pad, fo), jnp.bfloat16),
            jax.ShapeDtypeStruct((n_pad, 1), jnp.float32),
            jax.ShapeDtypeStruct((n_pad, 1), jnp.float32),
        ],
        compiler_params=cparams,
    )(x_pad, w_bf16, al, ar)

    # Free layout plumbing: el as a lane-major (1, N) row for broadcast over src.
    el_row = el_col.reshape(1, n_pad)

    # ---- attention + aggregation over dst-row tiles --------------------------
    tm = _choose_attn_tile(n_pad, fo, tile_budget)
    out = pl.pallas_call(
        _gat_attn_kernel,
        grid=(n_pad // tm,),
        in_specs=[
            const_spec((n_pad, fo)),                      # z (resident, all src, bf16)
            const_spec((1, n_pad)),                       # el (resident row)
            pl.BlockSpec((tm, 1), lambda t: (t, 0)),      # er tile (dst rows)
            const_spec((1, fo)),                          # bias
            pl.BlockSpec((tm, n_pad), lambda t: (t, 0)),  # adjacency tile (int8)
        ],
        out_specs=pl.BlockSpec((tm, fo), lambda t: (t, 0)),
        out_shape=jax.ShapeDtypeStruct((n_pad, fo), jnp.float32),
        compiler_params=cparams,
    )(z, el_row, er, bias, adj_i8)
    return out


def gat_dgl_forward(features, adj, params, *, single_buffer_constants=True):
    """Matches GAT_DGL.forward: h = layer1(g, x); h = elu(h); out = layer2(g, h)."""
    (w1, al1, ar1, b1), (w2, al2, ar2, b2) = params
    n, fi = features.shape
    hid = w1.shape[1]
    out_dim = w2.shape[1]

    n_pad = _round_up(n, _LANE)
    fi_pad = _round_up(fi, _LANE)
    fh_pad = _round_up(hid, _LANE)
    fo_pad = _round_up(out_dim, _LANE)

    # Lane-dense, zero-padded operands (layout plumbing only; padded feature
    # columns are zero and padded nodes have no edges, so the math is unchanged).
    x = _pad2(features.astype(jnp.float32), n_pad, fi_pad)
    adj_i8 = (_pad2(adj, n_pad, n_pad) != 0).astype(jnp.int8)

    def pad_layer(w, al, ar, b, fi_p, fo_p):
        return (_pad2(w, fi_p, fo_p).astype(jnp.bfloat16),
                _pad2(al, 1, fo_p).astype(jnp.float32),
                _pad2(ar, 1, fo_p).astype(jnp.float32),
                _pad2(b, 1, fo_p).astype(jnp.float32))

    p1 = pad_layer(w1, al1, ar1, b1, fi_pad, fh_pad)
    p2 = pad_layer(w2, al2, ar2, b2, fh_pad, fo_pad)

    h = gat_conv(x, adj_i8, *p1, apply_input_elu=False,
                 single_buffer_constants=single_buffer_constants)
    # ELU between the layers is fused into layer2's projection kernel.
    out = gat_conv(h, adj_i8, *p2, apply_input_elu=True,
                   single_buffer_constants=single_buffer_constants)

    out = out[:n, :out_dim]
    # DGL GATConv returns (N, num_heads, out_feats); num_heads == 1 here.
    return out.reshape(n, 1, out_dim)


def init_params(key, in_dim, hidden_dim, out_dim):
    ks = jax.random.split(key, 6)

    def xavier(k, shape):
        scale = jnp.sqrt(2.0 / (shape[0] + shape[1]))
        return jax.random.normal(k, shape, jnp.float32) * scale

    layer1 = (xavier(ks[0], (in_dim, hidden_dim)),
              jax.random.normal(ks[1], (1, hidden_dim), jnp.float32) * 0.1,
              jax.random.normal(ks[2], (1, hidden_dim), jnp.float32) * 0.1,
              jnp.zeros((1, hidden_dim), jnp.float32))
    layer2 = (xavier(ks[3], (hidden_dim, out_dim)),
              jax.random.normal(ks[4], (1, out_dim), jnp.float32) * 0.1,
              jax.random.normal(ks[5], (1, out_dim), jnp.float32) * 0.1,
              jnp.zeros((1, out_dim), jnp.float32))
    return layer1, layer2


if __name__ == "__main__":
    N, in_dim, hidden_dim, out_dim = 64, 16, 32, 8

    key = jax.random.PRNGKey(0)
    kp, kx, ka = jax.random.split(key, 3)

    params = init_params(kp, in_dim, hidden_dim, out_dim)
    features = jax.random.normal(kx, (N, in_dim), jnp.float32)

    # Deterministic graph: self-loops + ring + a few random extra edges.
    idx = jnp.arange(N)
    adj = jnp.zeros((N, N), jnp.float32)
    adj = adj.at[idx, idx].set(1.0)
    adj = adj.at[idx, (idx + 1) % N].set(1.0)
    adj = adj.at[idx, (idx - 1) % N].set(1.0)
    extra = (jax.random.uniform(ka, (N, N)) < 0.05).astype(jnp.float32)
    adj = jnp.maximum(adj, extra)

    try:
        out = jax.block_until_ready(
            gat_dgl_forward(features, adj, params, single_buffer_constants=True))
    except Exception:
        # Fallback if this JAX build rejects pl.Buffered(1) single-buffering on
        # grid-invariant blocks; the kernels themselves are identical.
        out = jax.block_until_ready(
            gat_dgl_forward(features, adj, params, single_buffer_constants=False))

    assert out.shape == (N, 1, out_dim)
    assert bool(jnp.all(jnp.isfinite(out)))
    print("KERNEL_OK")
</pallas_src>

<mosaic_0001>
module attributes {stable_mosaic.version = 11 : i64} {
  func.func @_gat_proj_kernel(%arg0: i32, %arg1: memref<128x128xf32, #tpu.memory_space<vmem>>, %arg2: memref<128x128xbf16, #tpu.memory_space<vmem>>, %arg3: memref<1x128xf32, #tpu.memory_space<vmem>>, %arg4: memref<1x128xf32, #tpu.memory_space<vmem>>, %arg5: memref<128x128xbf16, #tpu.memory_space<vmem>>, %arg6: memref<128x1xf32, #tpu.memory_space<vmem>>, %arg7: memref<128x1xf32, #tpu.memory_space<vmem>>) attributes {dimension_semantics = [#tpu.dimension_semantics<parallel>], iteration_bounds = array<i64: 1>, scalar_prefetch = 0 : i64, scratch_operands = 0 : i64, tpu.core_type = #tpu.core_type<tc>, window_params = [{transform_indices = @transform_0, window_bounds = array<i64: 128, 128>}, {pipeline_mode = #tpu.pipeline_mode<synchronous>, transform_indices = @transform_1, window_bounds = array<i64: 128, 128>}, {pipeline_mode = #tpu.pipeline_mode<synchronous>, transform_indices = @transform_2, window_bounds = array<i64: 1, 128>}, {pipeline_mode = #tpu.pipeline_mode<synchronous>, transform_indices = @transform_3, window_bounds = array<i64: 1, 128>}, {transform_indices = @transform_4, window_bounds = array<i64: 128, 128>}, {transform_indices = @transform_5, window_bounds = array<i64: 128, 1>}, {transform_indices = @transform_6, window_bounds = array<i64: 128, 1>}]} {
    %c0 = arith.constant 0 : index
    %c0_0 = arith.constant 0 : index
    %0 = vector.load %arg1[%c0, %c0_0] : memref<128x128xf32, #tpu.memory_space<vmem>>, vector<128x128xf32>
    %1 = arith.truncf %0 : vector<128x128xf32> to vector<128x128xbf16>
    %c0_1 = arith.constant 0 : index
    %c0_2 = arith.constant 0 : index
    %2 = vector.load %arg2[%c0_1, %c0_2] : memref<128x128xbf16, #tpu.memory_space<vmem>>, vector<128x128xbf16>
    %cst = arith.constant dense<0.000000e+00> : vector<128x128xf32>
    %3 = tpu.matmul %1, %2, %cst {dimension_numbers = #tpu.dot_dimension_numbers<[1], [0], [0], [1], [0, 0, 1, 1], [], []>} : vector<128x128xbf16>, vector<128x128xbf16>, vector<128x128xf32> -> vector<128x128xf32>
    %c0_3 = arith.constant 0 : index
    %c0_4 = arith.constant 0 : index
    %4 = vector.load %arg3[%c0_3, %c0_4] : memref<1x128xf32, #tpu.memory_space<vmem>>, vector<1x128xf32>
    %5 = vector.broadcast %4 : vector<1x128xf32> to vector<128x128xf32>
    %6 = arith.mulf %3, %5 : vector<128x128xf32>
    %cst_5 = arith.constant dense<0.000000e+00> : vector<128xf32>
    %7 = vector.multi_reduction <add>, %6, %cst_5 [1] : vector<128x128xf32> to vector<128xf32>
    %8 = vector.shape_cast %7 : vector<128xf32> to vector<128x1xf32>
    %c0_6 = arith.constant 0 : index
    %c0_7 = arith.constant 0 : index
    %9 = vector.load %arg6[%c0_6, %c0_7] : memref<128x1xf32, #tpu.memory_space<vmem>>, vector<128x1xf32>
    tpu.vector_store %arg6[%c0_6, %c0_7], %8 {strides = array<i32>} : memref<128x1xf32, #tpu.memory_space<vmem>>, vector<128x1xf32>,
    %c0_8 = arith.constant 0 : index
    %c0_9 = arith.constant 0 : index
    %10 = vector.load %arg4[%c0_8, %c0_9] : memref<1x128xf32, #tpu.memory_space<vmem>>, vector<1x128xf32>
    %11 = vector.broadcast %10 : vector<1x128xf32> to vector<128x128xf32>
    %12 = arith.mulf %3, %11 : vector<128x128xf32>
    %cst_10 = arith.constant dense<0.000000e+00> : vector<128xf32>
    %13 = vector.multi_reduction <add>, %12, %cst_10 [1] : vector<128x128xf32> to vector<128xf32>
    %14 = vector.shape_cast %13 : vector<128xf32> to vector<128x1xf32>
    %c0_11 = arith.constant 0 : index
    %c0_12 = arith.constant 0 : index
    %15 = vector.load %arg7[%c0_11, %c0_12] : memref<128x1xf32, #tpu.memory_space<vmem>>, vector<128x1xf32>
    tpu.vector_store %arg7[%c0_11, %c0_12], %14 {strides = array<i32>} : memref<128x1xf32, #tpu.memory_space<vmem>>, vector<128x1xf32>,
    %16 = arith.truncf %3 : vector<128x128xf32> to vector<128x128xbf16>
    %c0_13 = arith.constant 0 : index
    %c0_14 = arith.constant 0 : index
    %17 = vector.load %arg5[%c0_13, %c0_14] : memref<128x128xbf16, #tpu.memory_space<vmem>>, vector<128x128xbf16>
    tpu.vector_store %arg5[%c0_13, %c0_14], %16 {strides = array<i32>} : memref<128x128xbf16, #tpu.memory_space<vmem>>, vector<128x128xbf16>,
    return
  }
  func.func @transform_0(%arg0: i32) -> (i32, i32) {
    %c0_i32 = arith.constant 0 : i32
    %c0_i32_0 = arith.constant 0 : i32
    return %arg0, %c0_i32 : i32, i32
  }
  func.func @transform_1(%arg0: i32) -> (i32, i32) {
    %c0_i32 = arith.constant 0 : i32
    %c0_i32_0 = arith.constant 0 : i32
    %c0_i32_1 = arith.constant 0 : i32
    return %c0_i32, %c0_i32_0 : i32, i32
  }
  func.func @transform_2(%arg0: i32) -> (i32, i32) {
    %c0_i32 = arith.constant 0 : i32
    %c0_i32_0 = arith.constant 0 : i32
    %c0_i32_1 = arith.constant 0 : i32
    return %c0_i32, %c0_i32_0 : i32, i32
  }
  func.func @transform_3(%arg0: i32) -> (i32, i32) {
    %c0_i32 = arith.constant 0 : i32
    %c0_i32_0 = arith.constant 0 : i32
    %c0_i32_1 = arith.constant 0 : i32
    return %c0_i32, %c0_i32_0 : i32, i32
  }
  func.func @transform_4(%arg0: i32) -> (i32, i32) {
    %c0_i32 = arith.constant 0 : i32
    %c0_i32_0 = arith.constant 0 : i32
    return %arg0, %c0_i32 : i32, i32
  }
  func.func @transform_5(%arg0: i32) -> (i32, i32) {
    %c0_i32 = arith.constant 0 : i32
    %c0_i32_0 = arith.constant 0 : i32
    return %arg0, %c0_i32 : i32, i32
  }
  func.func @transform_6(%arg0: i32) -> (i32, i32) {
    %c0_i32 = arith.constant 0 : i32
    %c0_i32_0 = arith.constant 0 : i32
    return %arg0, %c0_i32 : i32, i32
  }
}

module attributes {stable_mosaic.version = 11 : i64} {
  func.func @_gat_proj_kernel(%arg0: i32, %arg1: memref<128x128xf32, #tpu.memory_space<vmem>>, %arg2: memref<128x128xbf16, #tpu.memory_space<vmem>>, %arg3: memref<1x128xf32, #tpu.memory_space<vmem>>, %arg4: memref<1x128xf32, #tpu.memory_space<vmem>>, %arg5: memref<128x128xbf16, #tpu.memory_space<vmem>>, %arg6: memref<128x1xf32, #tpu.memory_space<vmem>>, %arg7: memref<128x1xf32, #tpu.memory_space<vmem>>) attributes {dimension_semantics = [#tpu.dimension_semantics<parallel>], iteration_bounds = array<i64: 1>, scalar_prefetch = 0 : i64, scratch_operands = 0 : i64, tpu.core_type = #tpu.core_type<tc>, window_params = [{transform_indices = @transform_0, window_bounds = array<i64: 128, 128>}, {pipeline_mode = #tpu.pipeline_mode<synchronous>, transform_indices = @transform_1, window_bounds = array<i64: 128, 128>}, {pipeline_mode = #tpu.pipeline_mode<synchronous>, transform_indices = @transform_2, window_bounds = array<i64: 1, 128>}, {pipeline_mode = #tpu.pipeline_mode<synchronous>, transform_indices = @transform_3, window_bounds = array<i64: 1, 128>}, {transform_indices = @transform_4, window_bounds = array<i64: 128, 128>}, {transform_indices = @transform_5, window_bounds = array<i64: 128, 1>}, {transform_indices = @transform_6, window_bounds = array<i64: 128, 1>}]} {
    %c0 = arith.constant 0 : index
    %c0_0 = arith.constant 0 : index
    %0 = vector.load %arg1[%c0, %c0_0] : memref<128x128xf32, #tpu.memory_space<vmem>>, vector<128x128xf32>
    %1 = arith.truncf %0 : vector<128x128xf32> to vector<128x128xbf16>
    %c0_1 = arith.constant 0 : index
    %c0_2 = arith.constant 0 : index
    %2 = vector.load %arg2[%c0_1, %c0_2] : memref<128x128xbf16, #tpu.memory_space<vmem>>, vector<128x128xbf16>
    %cst = arith.constant dense<0.000000e+00> : vector<128x128xf32>
    %3 = tpu.matmul %1, %2, %cst {dimension_numbers = #tpu.dot_dimension_numbers<[1], [0], [0], [1], [0, 0, 1, 1], [], []>} : vector<128x128xbf16>, vector<128x128xbf16>, vector<128x128xf32> -> vector<128x128xf32>
    %c0_3 = arith.constant 0 : index
    %c0_4 = arith.constant 0 : index
    %4 = vector.load %arg3[%c0_3, %c0_4] : memref<1x128xf32, #tpu.memory_space<vmem>>, vector<1x128xf32>
    %5 = vector.broadcast %4 : vector<1x128xf32> to vector<128x128xf32>
    %6 = arith.mulf %3, %5 : vector<128x128xf32>
    %cst_5 = arith.constant dense<0.000000e+00> : vector<128xf32>
    %7 = vector.multi_reduction <add>, %6, %cst_5 [1] : vector<128x128xf32> to vector<128xf32>
    %8 = vector.shape_cast %7 : vector<128xf32> to vector<128x1xf32>
    %c0_6 = arith.constant 0 : index
    %c0_7 = arith.constant 0 : index
    %9 = vector.load %arg6[%c0_6, %c0_7] : memref<128x1xf32, #tpu.memory_space<vmem>>, vector<128x1xf32>
    tpu.vector_store %arg6[%c0_6, %c0_7], %8 {strides = array<i32>} : memref<128x1xf32, #tpu.memory_space<vmem>>, vector<128x1xf32>,
    %c0_8 = arith.constant 0 : index
    %c0_9 = arith.constant 0 : index
    %10 = vector.load %arg4[%c0_8, %c0_9] : memref<1x128xf32, #tpu.memory_space<vmem>>, vector<1x128xf32>
    %11 = vector.broadcast %10 : vector<1x128xf32> to vector<128x128xf32>
    %12 = arith.mulf %3, %11 : vector<128x128xf32>
    %cst_10 = arith.constant dense<0.000000e+00> : vector<128xf32>
    %13 = vector.multi_reduction <add>, %12, %cst_10 [1] : vector<128x128xf32> to vector<128xf32>
    %14 = vector.shape_cast %13 : vector<128xf32> to vector<128x1xf32>
    %c0_11 = arith.constant 0 : index
    %c0_12 = arith.constant 0 : index
    %15 = vector.load %arg7[%c0_11, %c0_12] : memref<128x1xf32, #tpu.memory_space<vmem>>, vector<128x1xf32>
    tpu.vector_store %arg7[%c0_11, %c0_12], %14 {strides = array<i32>} : memref<128x1xf32, #tpu.memory_space<vmem>>, vector<128x1xf32>,
    %16 = arith.truncf %3 : vector<128x128xf32> to vector<128x128xbf16>
    %c0_13 = arith.constant 0 : index
    %c0_14 = arith.constant 0 : index
    %17 = vector.load %arg5[%c0_13, %c0_14] : memref<128x128xbf16, #tpu.memory_space<vmem>>, vector<128x128xbf16>
    tpu.vector_store %arg5[%c0_13, %c0_14], %16 {strides = array<i32>} : memref<128x128xbf16, #tpu.memory_space<vmem>>, vector<128x128xbf16>,
    return
  }
  func.func @transform_0(%arg0: i32) -> (i32, i32) {
    %c0_i32 = arith.constant 0 : i32
    %c0_i32_0 = arith.constant 0 : i32
    return %arg0, %c0_i32 : i32, i32
  }
  func.func @transform_1(%arg0: i32) -> (i32, i32) {
    %c0_i32 = arith.constant 0 : i32
    %c0_i32_0 = arith.constant 0 : i32
    %c0_i32_1 = arith.constant 0 : i32
    return %c0_i32, %c0_i32_0 : i32, i32
  }
  func.func @transform_2(%arg0: i32) -> (i32, i32) {
    %c0_i32 = arith.constant 0 : i32
    %c0_i32_0 = arith.constant 0 : i32
    %c0_i32_1 = arith.constant 0 : i32
    return %c0_i32, %c0_i32_0 : i32, i32
  }
  func.func @transform_3(%arg0: i32) -> (i32, i32) {
    %c0_i32 = arith.constant 0 : i32
    %c0_i32_0 = arith.constant 0 : i32
    %c0_i32_1 = arith.constant 0 : i32
    return %c0_i32, %c0_i32_0 : i32, i32
  }
  func.func @transform_4(%arg0: i32) -> (i32, i32) {
    %c0_i32 = arith.constant 0 : i32
    %c0_i32_0 = arith.constant 0 : i32
    return %arg0, %c0_i32 : i32, i32
  }
  func.func @transform_5(%arg0: i32) -> (i32, i32) {
    %c0_i32 = arith.constant 0 : i32
    %c0_i32_0 = arith.constant 0 : i32
    return %arg0, %c0_i32 : i32, i32
  }
  func.func @transform_6(%arg0: i32) -> (i32, i32) {
    %c0_i32 = arith.constant 0 : i32
    %c0_i32_0 = arith.constant 0 : i32
    return %arg0, %c0_i32 : i32, i32
  }
}

</mosaic_0001>

<bundles_post_ra>
// kernel: tpu_custom_call.1
= control target key start
LH: loop header
LB: loop body
LE: loop exit
PB: predicated region body
PF: predicated region fallthrough
CT: control target
= control target key end

     0   :  { %12 = vsyncpa [#allocation3], 0  ;;  %s983_s0 = inlined_call_operand.hbm [shape: f32[128,128], index: 0, kind: input, shape index: {}]   ;;  %s984_s1 = inlined_call_operand.hbm [shape: bf16[128,128], index: 1, kind: input, shape index: {}]   ;;  %s985_s2 = inlined_call_operand.vmem [shape: f32[1,128], index: 2, kind: input, shape index: {}]   ;;  %s986_s3 = inlined_call_operand.vmem [shape: f32[1,128], index: 3, kind: input, shape index: {}]   ;;  %s987_s4 = inlined_call_operand.hbm [shape: bf16[128,128], index: 4, kind: output, shape index: {0}]   ;;  %s988_s5 = inlined_call_operand.vmem [shape: f32[128,1], index: 5, kind: output, shape index: {1}]   ;;  %s989_s6 = inlined_call_operand.vmem [shape: f32[128,1], index: 6, kind: output, shape index: {2}]  }
   0x1   :  { %13 = vsyncpa [#allocation6], 0 }
   0x2   :  { %14 = vsyncpa [#allocation4], 0  ;;  %s724_s21 = smov [#allocation2]   ;;  %s652_s25 = scalar_lea.hbm %s983_s0, 2048 }
   0x3   :  { %s20_s22 = sshll.u32 %s724_s21, 4  ;;  %p653_p0 = scmp.ne.s32.totalorder %s983_s0, %s652_s25  ;;  %s21_s22 = int_to_ptr.vmem [resolvable:$true] %s20_s22 }
   0x4   :  { %p656_p1 = scmp.lt.u32.totalorder %s652_s25, %s983_s0 }
   0x6   :  { %p658_p2 = pnand %p656_p1, %p653_p0 }
   0x8   :  { %661 = shalt.err (!%p658_p2)
}
   0x9   :  { %s662_s30 = scalar_lea.vmem %s21_s22, 2048  ;;  %p667_p4 = scmp.lt.s32.totalorder %s21_s22, %s21_s22 }
   0xa   :  { %p663_p3 = scmp.ne.s32.totalorder %s21_s22, %s662_s30  ;;  %p668_p5 = scmp.lt.s32.totalorder %s662_s30, %s662_s30 }
   0xc   :  { %p669_p6 = por %p668_p5, %p667_p4 }
   0xe   :  { %p670_p7 = pnand %p669_p6, %p663_p3 }
  0x10   :  { %673 = shalt.err (!%p670_p7)
}
  0x11   :  { %s725_s7 = smov 128   ;;  %s726_s8 = smov 8  }
  0x12   :  { %26 = dma.hbm_to_vmem [thread:$0]  %s983_s0, 2048, %s21_s22, [#allocation3], %s725_s7, %s725_s7, %s726_s8  }
  0x13   :  { %s727_s11 = smov [#allocation5]   ;;  %s674_s15 = scalar_lea.hbm %s984_s1, 1024 }
  0x14   :  { %s32_s12 = sshll.u32 %s727_s11, 4  ;;  %p675_p8 = scmp.ne.s32.totalorder %s984_s1, %s674_s15  ;;  %s33_s12 = int_to_ptr.vmem [resolvable:$true] %s32_s12 }
  0x15   :  { %p678_p9 = scmp.lt.u32.totalorder %s674_s15, %s984_s1 }
  0x17   :  { %p680_p10 = pnand %p678_p9, %p675_p8 }
  0x19   :  { %683 = shalt.err (!%p680_p10)
}
  0x1a   :  { %s684_s20 = scalar_lea.vmem %s33_s12, 1024  ;;  %p689_p12 = scmp.lt.s32.totalorder %s33_s12, %s33_s12 }
  0x1b   :  { %p685_p11 = scmp.ne.s32.totalorder %s33_s12, %s684_s20  ;;  %p690_p13 = scmp.lt.s32.totalorder %s684_s20, %s684_s20 }
  0x1d   :  { %p691_p0 = por %p690_p13, %p689_p12 }
  0x1f   :  { %p692_p1 = pnand %p691_p0, %p685_p11 }
  0x21   :  { %695 = shalt.err (!%p692_p1)
}
  0x22   :  { %s728_s0 = smov 64   ;;  %s729_s21 = smov 4  }
  0x23   :  { %38 = dma.hbm_to_vmem [thread:$0]  %s984_s1, 1024, %s33_s12, [#allocation6], %s728_s0, %s728_s0, %s729_s21  }
  0x24   :  { %718 = dma.done.wait [#allocation3], 2048  }
  0x25   :  { %719 = vsyncadd [#allocation3], 4294965248 }
  0x26   :  { %720 = dma.done.wait [#allocation6], 1024  }
  0x27   :  { %721 = vsyncadd [#allocation6], 4294966272  ;;  %v644_v0 = vld [vmem:[#allocation5] sm:$0xff]   ;;  %v645_v1 = vld [vmem:[#allocation5 + $0x8] sm:$0xff]  }
  0x28   :  { %589 = vmatprep.subr.bf16.mxu0 %v644_v0  ;;  %621 = vmatprep.subr.bf16.mxu1 %v644_v0  ;;  %v646_v2 = vld [vmem:[#allocation5 + $0x10] sm:$0xff]   ;;  %v647_v3 = vld [vmem:[#allocation5 + $0x18] sm:$0xff]   ;;  %v50_v4 = vld [vmem:[#allocation2] sm:$0xff] }
  0x29   :  { %590 = vmatpush3.bf16.msra.mxu0 %v644_v0  ;;  %629 = vmatpush3.bf16.msra.mxu1 %v644_v0  ;;  %v51_v5 = vld [vmem:[#allocation2 + $0x8] sm:$0xff]  ;;  %v58_v6 = vld [vmem:[#allocation2 + $0x40] sm:$0xff]  ;;  %v650_v12 = vld [vmem:[#allocation5 + $0x30] sm:$0xff]  }
  0x2a   :  { %591 = vmatprep.subr.bf16.mxu0 %v645_v1  ;;  %622 = vmatprep.subr.bf16.mxu1 %v645_v1  ;;  %v66_v7 = vpack.c.bf16 %v51_v5, %v50_v4  ;;  %v59_v8 = vld [vmem:[#allocation2 + $0x48] sm:$0xff]  ;;  %v648_v10 = vld [vmem:[#allocation5 + $0x20] sm:$0xff]   ;;  %v651_v13 = vld [vmem:[#allocation5 + $0x38] sm:$0xff]  }
  0x2b   :  { %v70_v9 = vpack.c.bf16 %v59_v8, %v58_v6  ;;  %v649_v11 = vld [vmem:[#allocation5 + $0x28] sm:$0xff]   ;;  %v52_v14 = vld [vmem:[#allocation2 + $0x10] sm:$0xff]  ;;  %v53_v15 = vld [vmem:[#allocation2 + $0x18] sm:$0xff] }
  0x2c   :  { %605 = vmatprep.mubr.bf16.mxu0 %v66_v7  ;;  %v60_v16 = vld [vmem:[#allocation2 + $0x50] sm:$0xff]  ;;  %v61_v17 = vld [vmem:[#allocation2 + $0x58] sm:$0xff]  ;;  %v54_v18 = vld [vmem:[#allocation2 + $0x20] sm:$0xff]  ;;  %v67_v22 = vpack.c.bf16 %v53_v15, %v52_v14 }
  0x2d   :  { %592 = vmatpush3.bf16.msra.mxu0 %v645_v1  ;;  %630 = vmatpush3.bf16.msra.mxu1 %v645_v1  ;;  %v55_v19 = vld [vmem:[#allocation2 + $0x28] sm:$0xff]  ;;  %v62_v20 = vld [vmem:[#allocation2 + $0x60] sm:$0xff]  ;;  %v71_v23 = vpack.c.bf16 %v61_v17, %v60_v16  ;;  %v56_v26 = vld [vmem:[#allocation2 + $0x30] sm:$0xff] }
  0x2e   :  { %593 = vmatprep.subr.bf16.mxu0 %v646_v2  ;;  %623 = vmatprep.subr.bf16.mxu1 %v646_v2  ;;  %v63_v21 = vld [vmem:[#allocation2 + $0x68] sm:$0xff]  ;;  %v68_v24 = vpack.c.bf16 %v55_v19, %v54_v18  ;;  %v57_v27 = vld [vmem:[#allocation2 + $0x38] sm:$0xff]  ;;  %v64_v28 = vld [vmem:[#allocation2 + $0x70] sm:$0xff] }
  0x2f   :  { %613 = vmatprep.mubr.bf16.mxu1 %v70_v9  ;;  %v72_v25 = vpack.c.bf16 %v63_v21, %v62_v20  ;;  %v65_v29 = vld [vmem:[#allocation2 + $0x78] sm:$0xff]  ;;  %v69_v30 = vpack.c.bf16 %v57_v27, %v56_v26  ;;  %v796_v32 = vld [vmem:[%s985_s2] ss:$0 sm:$0xff]  ;;  %s730_s2 = smov [#allocation7]  }
  0x30   :  { %v73_v31 = vpack.c.bf16 %v65_v29, %v64_v28  ;;  %v803_v41 = vld [vmem:[%s986_s3] ss:$0 sm:$0xff]  ;;  %s463_s3 = sshll.u32 %s730_s2, 4  ;;  %s464_s3 = int_to_ptr.vmem [resolvable:$true] %s463_s3 }
  0x31   :  { %594 = vmatpush3.bf16.msra.mxu0 %v646_v2  ;;  %631 = vmatpush3.bf16.msra.mxu1 %v646_v2  ;;  %s696_s27 = scalar_lea.vmem %s464_s3, 1024  ;;  %p701_p3 = scmp.lt.s32.totalorder %s464_s3, %s464_s3 }
  0x32   :  { %595 = vmatprep.subr.bf16.mxu0 %v647_v3  ;;  %624 = vmatprep.subr.bf16.mxu1 %v647_v3  ;;  %p697_p2 = scmp.ne.s32.totalorder %s464_s3, %s696_s27  ;;  %p702_p4 = scmp.lt.s32.totalorder %s696_s27, %s696_s27 }
  0x34   :  { %p703_p5 = por %p702_p4, %p701_p3 }
  0x35   :  { %596 = vmatpush3.bf16.msra.mxu0 %v647_v3  ;;  %632 = vmatpush3.bf16.msra.mxu1 %v647_v3 }
  0x36   :  { %597 = vmatprep.subr.bf16.mxu0 %v648_v10  ;;  %625 = vmatprep.subr.bf16.mxu1 %v648_v10  ;;  %p704_p6 = pnand %p703_p5, %p697_p2 }
  0x39   :  { %598 = vmatpush3.bf16.msra.mxu0 %v648_v10  ;;  %633 = vmatpush3.bf16.msra.mxu1 %v648_v10 }
  0x3a   :  { %599 = vmatprep.subr.bf16.mxu0 %v649_v11  ;;  %626 = vmatprep.subr.bf16.mxu1 %v649_v11 }
  0x3d   :  { %600 = vmatpush3.bf16.msra.mxu0 %v649_v11  ;;  %634 = vmatpush3.bf16.msra.mxu1 %v649_v11 }
  0x3e   :  { %601 = vmatprep.subr.bf16.mxu0 %v650_v12  ;;  %627 = vmatprep.subr.bf16.mxu1 %v650_v12 }
  0x41   :  { %602 = vmatpush3.bf16.msra.mxu0 %v650_v12  ;;  %635 = vmatpush3.bf16.msra.mxu1 %v650_v12 }
  0x42   :  { %603 = vmatprep.subr.bf16.mxu0 %v651_v13  ;;  %628 = vmatprep.subr.bf16.mxu1 %v651_v13 }
  0x45   :  { %604 = vmatpush3.bf16.msra.mxu0 %v651_v13  ;;  %636 = vmatpush3.bf16.msra.mxu1 %v651_v13 }
  0x48   :  { %606 = vmatmul.mubr.bf16.vlgmr.msra.gmra.mrb[0].mxu0 %v67_v22  ;;  %614 = vmatmul.mubr.bf16.vlgmr.msra.gmra.mrb[0].mxu1 %v71_v23 }
  0x49   :  { %609 = vmatprep.mubr.bf16.mxu0 %v68_v24  ;;  %617 = vmatprep.mubr.bf16.mxu1 %v72_v25 }
  0x50   :  { %610 = vmatmul.mubr.bf16.gmra.mrb[4].mxu0 %v69_v30  ;;  %618 = vmatmul.mubr.bf16.gmra.mrb[4].mxu1 %v73_v31 }
 0x11b   :  { %v607_v33 = vpop.f32.mrb[0].mxu0  ;;  %v615_v34 = vpop.f32.mrb[0].mxu1 }
 0x11c   :  { %v172_v35 = vpop.f32.mrb[1].mxu0  ;;  %v204_v36 = vpop.f32.mrb[1].mxu1  ;;  %v252_v37 = vmul.f32 %v615_v34, %v796_v32  ;;  %v244_v38 = vmul.f32 %v607_v33, %v796_v32  ;;  %v316_v48 = vmul.f32 %v607_v33, %v803_v41  ;;  %v324_v52 = vmul.f32 %v615_v34, %v803_v41 }
 0x11d   :  { %v608_v39 = vpop.f32.mrb[2].mxu0  ;;  %v616_v40 = vpop.f32.mrb[2].mxu1  ;;  %v242_v0 = vmul.f32 %v796_v32, %v172_v35  ;;  %v250_v2 = vmul.f32 %v796_v32, %v204_v36  ;;  %v314_v4 = vmul.f32 %v803_v41, %v172_v35  ;;  %v322_v6 = vmul.f32 %v803_v41, %v204_v36 }
 0x11e   :  { %v534_v42 = vpack.c.bf16 %v608_v39, %v607_v33  ;;  %v554_v43 = vpack.c.bf16 %v616_v40, %v615_v34  ;;  %278 = vadd.xlane.f32.xlu0 %v252_v37  ;;  %v207_v44 = vpop.f32.mrb[3].mxu1  ;;  %262 = vadd.xlane.f32.xlu1 %v244_v38  ;;  %v175_v45 = vpop.f32.mrb[3].mxu0  ;;  %v245_v49 = vmul.f32 %v608_v39, %v796_v32 }
 0x11f   :  { %v549_v46 = vpack.c.bf16 %v207_v44, %v204_v36  ;;  %v529_v47 = vpack.c.bf16 %v175_v45, %v172_v35  ;;  %v253_v53 = vmul.f32 %v616_v40, %v796_v32  ;;  %v317_v1 = vmul.f32 %v608_v39, %v803_v41 }
 0x120   :  { %566 = vst [vmem:[#allocation7 + $0x8] sm:$0xff] %v534_v42   ;;  %570 = vst [vmem:[#allocation7 + $0x28] sm:$0xff] %v554_v43   ;;  %v325_v3 = vmul.f32 %v616_v40, %v803_v41  ;;  %v251_v5 = vmul.f32 %v796_v32, %v207_v44  ;;  %v315_v7 = vmul.f32 %v803_v41, %v175_v45 }
 0x121   :  { %569 = vst [vmem:[#allocation7 + $0x20] sm:$0xff] %v549_v46   ;;  %530 = vst [vmem:[#allocation7] sm:$0xff] %v529_v47   ;;  %v323_v8 = vmul.f32 %v803_v41, %v207_v44  ;;  %v243_v9 = vmul.f32 %v796_v32, %v175_v45 }
 0x122   :  { %334 = vadd.xlane.f32.xlu0 %v316_v48  ;;  %264 = vadd.xlane.f32.xlu1 %v245_v49 }
 0x123   :  { %v611_v50 = vpop.f32.mrb[4].mxu0  ;;  %v807_v51 = vpop.f32.mrb[4].mxu1 }
 0x124   :  { %v188_v54 = vpop.f32.mrb[5].mxu0  ;;  %v220_v55 = vpop.f32.mrb[5].mxu1  ;;  %v248_v10 = vmul.f32 %v611_v50, %v796_v32  ;;  %v256_v12 = vmul.f32 %v807_v51, %v796_v32  ;;  %v320_v14 = vmul.f32 %v611_v50, %v803_v41  ;;  %v328_v24 = vmul.f32 %v807_v51, %v803_v41 }
 0x125   :  { %v612_v56 = vpop.f32.mrb[6].mxu0  ;;  %v620_v57 = vpop.f32.mrb[6].mxu1  ;;  %v246_v16 = vmul.f32 %v796_v32, %v188_v54  ;;  %v254_v18 = vmul.f32 %v796_v32, %v220_v55  ;;  %v318_v20 = vmul.f32 %v803_v41, %v188_v54  ;;  %v326_v22 = vmul.f32 %v803_v41, %v220_v55 }
 0x126   :  { %350 = vadd.xlane.f32.xlu0 %v324_v52  ;;  %280 = vadd.xlane.f32.xlu1 %v253_v53  ;;  %v544_v58 = vpack.c.bf16 %v612_v56, %v611_v50  ;;  %v191_v59 = vpop.f32.mrb[7].mxu0  ;;  %v564_v60 = vpack.c.bf16 %v620_v57, %v807_v51  ;;  %v223_v61 = vpop.f32.mrb[7].mxu1  ;;  %v249_v11 = vmul.f32 %v612_v56, %v796_v32 }
 0x127   :  { %v539_v62 = vpack.c.bf16 %v191_v59, %v188_v54  ;;  %v559_v63 = vpack.c.bf16 %v223_v61, %v220_v55  ;;  %v257_v13 = vmul.f32 %v620_v57, %v796_v32  ;;  %v321_v15 = vmul.f32 %v612_v56, %v803_v41 }
 0x128   :  { %568 = vst [vmem:[#allocation7 + $0x18] sm:$0xff] %v544_v58   ;;  %572 = vst [vmem:[#allocation7 + $0x38] sm:$0xff] %v564_v60   ;;  %v247_v17 = vmul.f32 %v796_v32, %v191_v59  ;;  %v255_v19 = vmul.f32 %v796_v32, %v223_v61  ;;  %v319_v21 = vmul.f32 %v803_v41, %v191_v59 }
 0x129   :  { %567 = vst [vmem:[#allocation7 + $0x10] sm:$0xff] %v539_v62   ;;  %571 = vst [vmem:[#allocation7 + $0x30] sm:$0xff] %v559_v63   ;;  %v327_v23 = vmul.f32 %v803_v41, %v223_v61  ;;  %v329_v25 = vmul.f32 %v620_v57, %v803_v41 }
 0x12a   :  { %258 = vadd.xlane.f32.xlu0 %v242_v0  ;;  %336 = vadd.xlane.f32.xlu1 %v317_v1 }
 0x12e   :  { %274 = vadd.xlane.f32.xlu0 %v250_v2  ;;  %352 = vadd.xlane.f32.xlu1 %v325_v3 }
 0x132   :  { %330 = vadd.xlane.f32.xlu0 %v314_v4  ;;  %276 = vadd.xlane.f32.xlu1 %v251_v5 }
 0x136   :  { %346 = vadd.xlane.f32.xlu0 %v322_v6  ;;  %332 = vadd.xlane.f32.xlu1 %v315_v7 }
 0x13a   :  { %348 = vadd.xlane.f32.xlu1 %v323_v8  ;;  %260 = vadd.xlane.f32.xlu0 %v243_v9 }
 0x13e   :  { %270 = vadd.xlane.f32.xlu0 %v248_v10  ;;  %272 = vadd.xlane.f32.xlu1 %v249_v11 }
 0x142   :  { %286 = vadd.xlane.f32.xlu0 %v256_v12  ;;  %288 = vadd.xlane.f32.xlu1 %v257_v13 }
 0x146   :  { %342 = vadd.xlane.f32.xlu0 %v320_v14  ;;  %344 = vadd.xlane.f32.xlu1 %v321_v15 }
 0x14a   :  { %266 = vadd.xlane.f32.xlu0 %v246_v16  ;;  %268 = vadd.xlane.f32.xlu1 %v247_v17 }
 0x14e   :  { %282 = vadd.xlane.f32.xlu0 %v254_v18  ;;  %284 = vadd.xlane.f32.xlu1 %v255_v19 }
 0x152   :  { %338 = vadd.xlane.f32.xlu0 %v318_v20  ;;  %340 = vadd.xlane.f32.xlu1 %v319_v21 }
 0x156   :  { %354 = vadd.xlane.f32.xlu0 %v326_v22  ;;  %356 = vadd.xlane.f32.xlu1 %v327_v23 }
 0x15a   :  { %358 = vadd.xlane.f32.xlu0 %v328_v24  ;;  %360 = vadd.xlane.f32.xlu1 %v329_v25 }
 0x15b   :  { %707 = shalt.err (!%p704_p6)
}
 0x15c   :  { %s708_s30 = scalar_lea.hbm %s987_s4, 1024 }
 0x15d   :  { %p709_p7 = scmp.ne.s32.totalorder %s987_s4, %s708_s30  ;;  %p712_p8 = scmp.lt.u32.totalorder %s708_s30, %s987_s4 }
 0x15f   :  { %p714_p9 = pnand %p712_p8, %p709_p7 }
 0x161   :  { %717 = shalt.err (!%p714_p9)
}
 0x162   :  { %469 = dma.vmem_to_hbm [thread:$0]  %s464_s3, 1024, %s987_s4, [#allocation4], %s728_s0, %s728_s0, %s729_s21   ;;  %vm290_vm0 = vcmask 7168  }
 0x1ab   :  { %v279_v26 = vpop.xlane.xlu0 %278  ;;  %v263_v27 = vpop.xlane.xlu1 %262 }
 0x1ac   :  { %301 = vst.msk [vmem:[%s988_s5 + $0x50] sm:$0xff] %vm290_vm0, %v279_v26  ;;  %293 = vst.msk [vmem:[%s988_s5 + $0x10] sm:$0xff] %vm290_vm0, %v263_v27 }
 0x1af   :  { %v335_v28 = vpop.xlane.xlu0 %334  ;;  %v265_v29 = vpop.xlane.xlu1 %264 }
 0x1b0   :  { %364 = vst.msk [vmem:[%s989_s6 + $0x10] sm:$0xff] %vm290_vm0, %v335_v28  ;;  %294 = vst.msk [vmem:[%s988_s5 + $0x18] sm:$0xff] %vm290_vm0, %v265_v29 }
 0x1b3   :  { %v351_v30 = vpop.xlane.xlu0 %350  ;;  %v281_v31 = vpop.xlane.xlu1 %280 }
 0x1b4   :  { %372 = vst.msk [vmem:[%s989_s6 + $0x50] sm:$0xff] %vm290_vm0, %v351_v30  ;;  %302 = vst.msk [vmem:[%s988_s5 + $0x58] sm:$0xff] %vm290_vm0, %v281_v31 }
 0x1b7   :  { %v259_v32 = vpop.xlane.xlu0 %258  ;;  %v337_v33 = vpop.xlane.xlu1 %336 }
 0x1b8   :  { %291 = vst.msk [vmem:[%s988_s5] sm:$0xff] %vm290_vm0, %v259_v32  ;;  %365 = vst.msk [vmem:[%s989_s6 + $0x18] sm:$0xff] %vm290_vm0, %v337_v33 }
 0x1bb   :  { %v275_v34 = vpop.xlane.xlu0 %274  ;;  %v353_v35 = vpop.xlane.xlu1 %352 }
 0x1bc   :  { %299 = vst.msk [vmem:[%s988_s5 + $0x40] sm:$0xff] %vm290_vm0, %v275_v34  ;;  %373 = vst.msk [vmem:[%s989_s6 + $0x58] sm:$0xff] %vm290_vm0, %v353_v35 }
 0x1bf   :  { %v331_v36 = vpop.xlane.xlu0 %330  ;;  %v277_v37 = vpop.xlane.xlu1 %276 }
 0x1c0   :  { %362 = vst.msk [vmem:[%s989_s6] sm:$0xff] %vm290_vm0, %v331_v36  ;;  %300 = vst.msk [vmem:[%s988_s5 + $0x48] sm:$0xff] %vm290_vm0, %v277_v37 }
 0x1c3   :  { %v347_v38 = vpop.xlane.xlu0 %346  ;;  %v333_v39 = vpop.xlane.xlu1 %332 }
 0x1c4   :  { %370 = vst.msk [vmem:[%s989_s6 + $0x40] sm:$0xff] %vm290_vm0, %v347_v38  ;;  %363 = vst.msk [vmem:[%s989_s6 + $0x8] sm:$0xff] %vm290_vm0, %v333_v39 }
 0x1c7   :  { %v349_v40 = vpop.xlane.xlu1 %348  ;;  %v261_v41 = vpop.xlane.xlu0 %260 }
 0x1c8   :  { %371 = vst.msk [vmem:[%s989_s6 + $0x48] sm:$0xff] %vm290_vm0, %v349_v40  ;;  %292 = vst.msk [vmem:[%s988_s5 + $0x8] sm:$0xff] %vm290_vm0, %v261_v41 }
 0x1cb   :  { %v271_v42 = vpop.xlane.xlu0 %270  ;;  %v273_v43 = vpop.xlane.xlu1 %272 }
 0x1cc   :  { %297 = vst.msk [vmem:[%s988_s5 + $0x30] sm:$0xff] %vm290_vm0, %v271_v42  ;;  %298 = vst.msk [vmem:[%s988_s5 + $0x38] sm:$0xff] %vm290_vm0, %v273_v43 }
 0x1cf   :  { %v287_v44 = vpop.xlane.xlu0 %286  ;;  %v289_v45 = vpop.xlane.xlu1 %288 }
 0x1d0   :  { %305 = vst.msk [vmem:[%s988_s5 + $0x70] sm:$0xff] %vm290_vm0, %v287_v44  ;;  %306 = vst.msk [vmem:[%s988_s5 + $0x78] sm:$0xff] %vm290_vm0, %v289_v45 }
 0x1d3   :  { %v343_v46 = vpop.xlane.xlu0 %342  ;;  %v345_v47 = vpop.xlane.xlu1 %344 }
 0x1d4   :  { %368 = vst.msk [vmem:[%s989_s6 + $0x30] sm:$0xff] %vm290_vm0, %v343_v46  ;;  %369 = vst.msk [vmem:[%s989_s6 + $0x38] sm:$0xff] %vm290_vm0, %v345_v47 }
 0x1d7   :  { %v267_v48 = vpop.xlane.xlu0 %266  ;;  %v269_v49 = vpop.xlane.xlu1 %268 }
 0x1d8   :  { %295 = vst.msk [vmem:[%s988_s5 + $0x20] sm:$0xff] %vm290_vm0, %v267_v48  ;;  %296 = vst.msk [vmem:[%s988_s5 + $0x28] sm:$0xff] %vm290_vm0, %v269_v49 }
 0x1db   :  { %v283_v50 = vpop.xlane.xlu0 %282  ;;  %v285_v51 = vpop.xlane.xlu1 %284 }
 0x1dc   :  { %303 = vst.msk [vmem:[%s988_s5 + $0x60] sm:$0xff] %vm290_vm0, %v283_v50  ;;  %304 = vst.msk [vmem:[%s988_s5 + $0x68] sm:$0xff] %vm290_vm0, %v285_v51 }
 0x1df   :  { %v339_v52 = vpop.xlane.xlu0 %338  ;;  %v341_v53 = vpop.xlane.xlu1 %340 }
 0x1e0   :  { %366 = vst.msk [vmem:[%s989_s6 + $0x20] sm:$0xff] %vm290_vm0, %v339_v52  ;;  %367 = vst.msk [vmem:[%s989_s6 + $0x28] sm:$0xff] %vm290_vm0, %v341_v53 }
 0x1e3   :  { %v355_v54 = vpop.xlane.xlu0 %354  ;;  %v357_v55 = vpop.xlane.xlu1 %356 }
 0x1e4   :  { %374 = vst.msk [vmem:[%s989_s6 + $0x60] sm:$0xff] %vm290_vm0, %v355_v54  ;;  %375 = vst.msk [vmem:[%s989_s6 + $0x68] sm:$0xff] %vm290_vm0, %v357_v55 }
 0x1e7   :  { %v359_v56 = vpop.xlane.xlu0 %358  ;;  %v361_v57 = vpop.xlane.xlu1 %360 }
 0x1e8   :  { %376 = vst.msk [vmem:[%s989_s6 + $0x70] sm:$0xff] %vm290_vm0, %v359_v56  ;;  %377 = vst.msk [vmem:[%s989_s6 + $0x78] sm:$0xff] %vm290_vm0, %v361_v57 }
 0x1e9   :  { %722 = dma.done.wait [#allocation4], 1024  }
 0x1ea   :  { %723 = vsyncadd [#allocation4], 4294966272 }
 0x1eb   :  { %481 = vsyncpa [#allocation3], 1 }
 0x1ec   :  { %482 = vsyncpa [#allocation6], 1 }
 0x1ed   :  { %483 = vsyncpa [#allocation4], 1 }

// kernel: tpu_custom_call.1
= control target key start
LH: loop header
LB: loop body
LE: loop exit
PB: predicated region body
PF: predicated region fallthrough
CT: control target
= control target key end

     0   :  { %12 = vsyncpa [#allocation3], 0  ;;  %s983_s0 = inlined_call_operand.hbm [shape: f32[128,128], index: 0, kind: input, shape index: {}]   ;;  %s984_s1 = inlined_call_operand.hbm [shape: bf16[128,128], index: 1, kind: input, shape index: {}]   ;;  %s985_s2 = inlined_call_operand.vmem [shape: f32[1,128], index: 2, kind: input, shape index: {}]   ;;  %s986_s3 = inlined_call_operand.vmem [shape: f32[1,128], index: 3, kind: input, shape index: {}]   ;;  %s987_s4 = inlined_call_operand.hbm [shape: bf16[128,128], index: 4, kind: output, shape index: {0}]   ;;  %s988_s5 = inlined_call_operand.vmem [shape: f32[128,1], index: 5, kind: output, shape index: {1}]   ;;  %s989_s6 = inlined_call_operand.vmem [shape: f32[128,1], index: 6, kind: output, shape index: {2}]  }
   0x1   :  { %13 = vsyncpa [#allocation6], 0 }
   0x2   :  { %14 = vsyncpa [#allocation4], 0  ;;  %s724_s21 = smov [#allocation2]   ;;  %s652_s25 = scalar_lea.hbm %s983_s0, 2048 }
   0x3   :  { %s20_s22 = sshll.u32 %s724_s21, 4  ;;  %p653_p0 = scmp.ne.s32.totalorder %s983_s0, %s652_s25  ;;  %s21_s22 = int_to_ptr.vmem [resolvable:$true] %s20_s22 }
   0x4   :  { %p656_p1 = scmp.lt.u32.totalorder %s652_s25, %s983_s0 }
   0x6   :  { %p658_p2 = pnand %p656_p1, %p653_p0 }
   0x8   :  { %661 = shalt.err (!%p658_p2)
}
   0x9   :  { %s662_s30 = scalar_lea.vmem %s21_s22, 2048  ;;  %p667_p4 = scmp.lt.s32.totalorder %s21_s22, %s21_s22 }
   0xa   :  { %p663_p3 = scmp.ne.s32.totalorder %s21_s22, %s662_s30  ;;  %p668_p5 = scmp.lt.s32.totalorder %s662_s30, %s662_s30 }
   0xc   :  { %p669_p6 = por %p668_p5, %p667_p4 }
   0xe   :  { %p670_p7 = pnand %p669_p6, %p663_p3 }
  0x10   :  { %673 = shalt.err (!%p670_p7)
}
  0x11   :  { %s725_s7 = smov 128   ;;  %s726_s8 = smov 8  }
  0x12   :  { %26 = dma.hbm_to_vmem [thread:$0]  %s983_s0, 2048, %s21_s22, [#allocation3], %s725_s7, %s725_s7, %s726_s8  }
  0x13   :  { %s727_s11 = smov [#allocation5]   ;;  %s674_s15 = scalar_lea.hbm %s984_s1, 1024 }
  0x14   :  { %s32_s12 = sshll.u32 %s727_s11, 4  ;;  %p675_p8 = scmp.ne.s32.totalorder %s984_s1, %s674_s15  ;;  %s33_s12 = int_to_ptr.vmem [resolvable:$true] %s32_s12 }
  0x15   :  { %p678_p9 = scmp.lt.u32.totalorder %s674_s15, %s984_s1 }
  0x17   :  { %p680_p10 = pnand %p678_p9, %p675_p8 }
  0x19   :  { %683 = shalt.err (!%p680_p10)
}
  0x1a   :  { %s684_s20 = scalar_lea.vmem %s33_s12, 1024  ;;  %p689_p12 = scmp.lt.s32.totalorder %s33_s12, %s33_s12 }
  0x1b   :  { %p685_p11 = scmp.ne.s32.totalorder %s33_s12, %s684_s20  ;;  %p690_p13 = scmp.lt.s32.totalorder %s684_s20, %s684_s20 }
  0x1d   :  { %p691_p0 = por %p690_p13, %p689_p12 }
  0x1f   :  { %p692_p1 = pnand %p691_p0, %p685_p11 }
  0x21   :  { %695 = shalt.err (!%p692_p1)
}
  0x22   :  { %s728_s0 = smov 64   ;;  %s729_s21 = smov 4  }
  0x23   :  { %38 = dma.hbm_to_vmem [thread:$0]  %s984_s1, 1024, %s33_s12, [#allocation6], %s728_s0, %s728_s0, %s729_s21  }
  0x24   :  { %718 = dma.done.wait [#allocation3], 2048  }
  0x25   :  { %719 = vsyncadd [#allocation3], 4294965248 }
  0x26   :  { %720 = dma.done.wait [#allocation6], 1024  }
  0x27   :  { %721 = vsyncadd [#allocation6], 4294966272  ;;  %v644_v0 = vld [vmem:[#allocation5] sm:$0xff]   ;;  %v645_v1 = vld [vmem:[#allocation5 + $0x8] sm:$0xff]  }
  0x28   :  { %589 = vmatprep.subr.bf16.mxu0 %v644_v0  ;;  %621 = vmatprep.subr.bf16.mxu1 %v644_v0  ;;  %v646_v2 = vld [vmem:[#allocation5 + $0x10] sm:$0xff]   ;;  %v647_v3 = vld [vmem:[#allocation5 + $0x18] sm:$0xff]   ;;  %v50_v4 = vld [vmem:[#allocation2] sm:$0xff] }
  0x29   :  { %590 = vmatpush3.bf16.msra.mxu0 %v644_v0  ;;  %629 = vmatpush3.bf16.msra.mxu1 %v644_v0  ;;  %v51_v5 = vld [vmem:[#allocation2 + $0x8] sm:$0xff]  ;;  %v58_v6 = vld [vmem:[#allocation2 + $0x40] sm:$0xff]  ;;  %v650_v12 = vld [vmem:[#allocation5 + $0x30] sm:$0xff]  }
  0x2a   :  { %591 = vmatprep.subr.bf16.mxu0 %v645_v1  ;;  %622 = vmatprep.subr.bf16.mxu1 %v645_v1  ;;  %v66_v7 = vpack.c.bf16 %v51_v5, %v50_v4  ;;  %v59_v8 = vld [vmem:[#allocation2 + $0x48] sm:$0xff]  ;;  %v648_v10 = vld [vmem:[#allocation5 + $0x20] sm:$0xff]   ;;  %v651_v13 = vld [vmem:[#allocation5 + $0x38] sm:$0xff]  }
  0x2b   :  { %v70_v9 = vpack.c.bf16 %v59_v8, %v58_v6  ;;  %v649_v11 = vld [vmem:[#allocation5 + $0x28] sm:$0xff]   ;;  %v52_v14 = vld [vmem:[#allocation2 + $0x10] sm:$0xff]  ;;  %v53_v15 = vld [vmem:[#allocation2 + $0x18] sm:$0xff] }
  0x2c   :  { %605 = vmatprep.mubr.bf16.mxu0 %v66_v7  ;;  %v60_v16 = vld [vmem:[#allocation2 + $0x50] sm:$0xff]  ;;  %v61_v17 = vld [vmem:[#allocation2 + $0x58] sm:$0xff]  ;;  %v54_v18 = vld [vmem:[#allocation2 + $0x20] sm:$0xff]  ;;  %v67_v22 = vpack.c.bf16 %v53_v15, %v52_v14 }
  0x2d   :  { %592 = vmatpush3.bf16.msra.mxu0 %v645_v1  ;;  %630 = vmatpush3.bf16.msra.mxu1 %v645_v1  ;;  %v55_v19 = vld [vmem:[#allocation2 + $0x28] sm:$0xff]  ;;  %v62_v20 = vld [vmem:[#allocation2 + $0x60] sm:$0xff]  ;;  %v71_v23 = vpack.c.bf16 %v61_v17, %v60_v16  ;;  %v56_v26 = vld [vmem:[#allocation2 + $0x30] sm:$0xff] }
  0x2e   :  { %593 = vmatprep.subr.bf16.mxu0 %v646_v2  ;;  %623 = vmatprep.subr.bf16.mxu1 %v646_v2  ;;  %v63_v21 = vld [vmem:[#allocation2 + $0x68] sm:$0xff]  ;;  %v68_v24 = vpack.c.bf16 %v55_v19, %v54_v18  ;;  %v57_v27 = vld [vmem:[#allocation2 + $0x38] sm:$0xff]  ;;  %v64_v28 = vld [vmem:[#allocation2 + $0x70] sm:$0xff] }
  0x2f   :  { %613 = vmatprep.mubr.bf16.mxu1 %v70_v9  ;;  %v72_v25 = vpack.c.bf16 %v63_v21, %v62_v20  ;;  %v65_v29 = vld [vmem:[#allocation2 + $0x78] sm:$0xff]  ;;  %v69_v30 = vpack.c.bf16 %v57_v27, %v56_v26  ;;  %v796_v32 = vld [vmem:[%s985_s2] ss:$0 sm:$0xff]  ;;  %s730_s2 = smov [#allocation7]  }
  0x30   :  { %v73_v31 = vpack.c.bf16 %v65_v29, %v64_v28  ;;  %v803_v41 = vld [vmem:[%s986_s3] ss:$0 sm:$0xff]  ;;  %s463_s3 = sshll.u32 %s730_s2, 4  ;;  %s464_s3 = int_to_ptr.vmem [resolvable:$true] %s463_s3 }
  0x31   :  { %594 = vmatpush3.bf16.msra.mxu0 %v646_v2  ;;  %631 = vmatpush3.bf16.msra.mxu1 %v646_v2  ;;  %s696_s27 = scalar_lea.vmem %s464_s3, 1024  ;;  %p701_p3 = scmp.lt.s32.totalorder %s464_s3, %s464_s3 }
  0x32   :  { %595 = vmatprep.subr.bf16.mxu0 %v647_v3  ;;  %624 = vmatprep.subr.bf16.mxu1 %v647_v3  ;;  %p697_p2 = scmp.ne.s32.totalorder %s464_s3, %s696_s27  ;;  %p702_p4 = scmp.lt.s32.totalorder %s696_s27, %s696_s27 }
  0x34   :  { %p703_p5 = por %p702_p4, %p701_p3 }
  0x35   :  { %596 = vmatpush3.bf16.msra.mxu0 %v647_v3  ;;  %632 = vmatpush3.bf16.msra.mxu1 %v647_v3 }
  0x36   :  { %597 = vmatprep.subr.bf16.mxu0 %v648_v10  ;;  %625 = vmatprep.subr.bf16.mxu1 %v648_v10  ;;  %p704_p6 = pnand %p703_p5, %p697_p2 }
  0x39   :  { %598 = vmatpush3.bf16.msra.mxu0 %v648_v10  ;;  %633 = vmatpush3.bf16.msra.mxu1 %v648_v10 }
  0x3a   :  { %599 = vmatprep.subr.bf16.mxu0 %v649_v11  ;;  %626 = vmatprep.subr.bf16.mxu1 %v649_v11 }
  0x3d   :  { %600 = vmatpush3.bf16.msra.mxu0 %v649_v11  ;;  %634 = vmatpush3.bf16.msra.mxu1 %v649_v11 }
  0x3e   :  { %601 = vmatprep.subr.bf16.mxu0 %v650_v12  ;;  %627 = vmatprep.subr.bf16.mxu1 %v650_v12 }
  0x41   :  { %602 = vmatpush3.bf16.msra.mxu0 %v650_v12  ;;  %635 = vmatpush3.bf16.msra.mxu1 %v650_v12 }
  0x42   :  { %603 = vmatprep.subr.bf16.mxu0 %v651_v13  ;;  %628 = vmatprep.subr.bf16.mxu1 %v651_v13 }
  0x45   :  { %604 = vmatpush3.bf16.msra.mxu0 %v651_v13  ;;  %636 = vmatpush3.bf16.msra.mxu1 %v651_v13 }
  0x48   :  { %606 = vmatmul.mubr.bf16.vlgmr.msra.gmra.mrb[0].mxu0 %v67_v22  ;;  %614 = vmatmul.mubr.bf16.vlgmr.msra.gmra.mrb[0].mxu1 %v71_v23 }
  0x49   :  { %609 = vmatprep.mubr.bf16.mxu0 %v68_v24  ;;  %617 = vmatprep.mubr.bf16.mxu1 %v72_v25 }
  0x50   :  { %610 = vmatmul.mubr.bf16.gmra.mrb[4].mxu0 %v69_v30  ;;  %618 = vmatmul.mubr.bf16.gmra.mrb[4].mxu1 %v73_v31 }
 0x11b   :  { %v607_v33 = vpop.f32.mrb[0].mxu0  ;;  %v615_v34 = vpop.f32.mrb[0].mxu1 }
 0x11c   :  { %v172_v35 = vpop.f32.mrb[1].mxu0  ;;  %v204_v36 = vpop.f32.mrb[1].mxu1  ;;  %v252_v37 = vmul.f32 %v615_v34, %v796_v32  ;;  %v244_v38 = vmul.f32 %v607_v33, %v796_v32  ;;  %v316_v48 = vmul.f32 %v607_v33, %v803_v41  ;;  %v324_v52 = vmul.f32 %v615_v34, %v803_v41 }
 0x11d   :  { %v608_v39 = vpop.f32.mrb[2].mxu0  ;;  %v616_v40 = vpop.f32.mrb[2].mxu1  ;;  %v242_v0 = vmul.f32 %v796_v32, %v172_v35  ;;  %v250_v2 = vmul.f32 %v796_v32, %v204_v36  ;;  %v314_v4 = vmul.f32 %v803_v41, %v172_v35  ;;  %v322_v6 = vmul.f32 %v803_v41, %v204_v36 }
 0x11e   :  { %v534_v42 = vpack.c.bf16 %v608_v39, %v607_v33  ;;  %v554_v43 = vpack.c.bf16 %v616_v40, %v615_v34  ;;  %278 = vadd.xlane.f32.xlu0 %v252_v37  ;;  %v207_v44 = vpop.f32.mrb[3].mxu1  ;;  %262 = vadd.xlane.f32.xlu1 %v244_v38  ;;  %v175_v45 = vpop.f32.mrb[3].mxu0  ;;  %v245_v49 = vmul.f32 %v608_v39, %v796_v32 }
 0x11f   :  { %v549_v46 = vpack.c.bf16 %v207_v44, %v204_v36  ;;  %v529_v47 = vpack.c.bf16 %v175_v45, %v172_v35  ;;  %v253_v53 = vmul.f32 %v616_v40, %v796_v32  ;;  %v317_v1 = vmul.f32 %v608_v39, %v803_v41 }
 0x120   :  { %566 = vst [vmem:[#allocation7 + $0x8] sm:$0xff] %v534_v42   ;;  %570 = vst [vmem:[#allocation7 + $0x28] sm:$0xff] %v554_v43   ;;  %v325_v3 = vmul.f32 %v616_v40, %v803_v41  ;;  %v251_v5 = vmul.f32 %v796_v32, %v207_v44  ;;  %v315_v7 = vmul.f32 %v803_v41, %v175_v45 }
 0x121   :  { %569 = vst [vmem:[#allocation7 + $0x20] sm:$0xff] %v549_v46   ;;  %530 = vst [vmem:[#allocation7] sm:$0xff] %v529_v47   ;;  %v323_v8 = vmul.f32 %v803_v41, %v207_v44  ;;  %v243_v9 = vmul.f32 %v796_v32, %v175_v45 }
 0x122   :  { %334 = vadd.xlane.f32.xlu0 %v316_v48  ;;  %264 = vadd.xlane.f32.xlu1 %v245_v49 }
 0x123   :  { %v611_v50 = vpop.f32.mrb[4].mxu0  ;;  %v807_v51 = vpop.f32.mrb[4].mxu1 }
 0x124   :  { %v188_v54 = vpop.f32.mrb[5].mxu0  ;;  %v220_v55 = vpop.f32.mrb[5].mxu1  ;;  %v248_v10 = vmul.f32 %v611_v50, %v796_v32  ;;  %v256_v12 = vmul.f32 %v807_v51, %v796_v32  ;;  %v320_v14 = vmul.f32 %v611_v50, %v803_v41  ;;  %v328_v24 = vmul.f32 %v807_v51, %v803_v41 }
 0x125   :  { %v612_v56 = vpop.f32.mrb[6].mxu0  ;;  %v620_v57 = vpop.f32.mrb[6].mxu1  ;;  %v246_v16 = vmul.f32 %v796_v32, %v188_v54  ;;  %v254_v18 = vmul.f32 %v796_v32, %v220_v55  ;;  %v318_v20 = vmul.f32 %v803_v41, %v188_v54  ;;  %v326_v22 = vmul.f32 %v803_v41, %v220_v55 }
 0x126   :  { %350 = vadd.xlane.f32.xlu0 %v324_v52  ;;  %280 = vadd.xlane.f32.xlu1 %v253_v53  ;;  %v544_v58 = vpack.c.bf16 %v612_v56, %v611_v50  ;;  %v191_v59 = vpop.f32.mrb[7].mxu0  ;;  %v564_v60 = vpack.c.bf16 %v620_v57, %v807_v51  ;;  %v223_v61 = vpop.f32.mrb[7].mxu1  ;;  %v249_v11 = vmul.f32 %v612_v56, %v796_v32 }
 0x127   :  { %v539_v62 = vpack.c.bf16 %v191_v59, %v188_v54  ;;  %v559_v63 = vpack.c.bf16 %v223_v61, %v220_v55  ;;  %v257_v13 = vmul.f32 %v620_v57, %v796_v32  ;;  %v321_v15 = vmul.f32 %v612_v56, %v803_v41 }
 0x128   :  { %568 = vst [vmem:[#allocation7 + $0x18] sm:$0xff] %v544_v58   ;;  %572 = vst [vmem:[#allocation7 + $0x38] sm:$0xff] %v564_v60   ;;  %v247_v17 = vmul.f32 %v796_v32, %v191_v59  ;;  %v255_v19 = vmul.f32 %v796_v32, %v223_v61  ;;  %v319_v21 = vmul.f32 %v803_v41, %v191_v59 }
 0x129   :  { %567 = vst [vmem:[#allocation7 + $0x10] sm:$0xff] %v539_v62   ;;  %571 = vst [vmem:[#allocation7 + $0x30] sm:$0xff] %v559_v63   ;;  %v327_v23 = vmul.f32 %v803_v41, %v223_v61  ;;  %v329_v25 = vmul.f32 %v620_v57, %v803_v41 }
 0x12a   :  { %258 = vadd.xlane.f32.xlu0 %v242_v0  ;;  %336 = vadd.xlane.f32.xlu1 %v317_v1 }
 0x12e   :  { %274 = vadd.xlane.f32.xlu0 %v250_v2  ;;  %352 = vadd.xlane.f32.xlu1 %v325_v3 }
 0x132   :  { %330 = vadd.xlane.f32.xlu0 %v314_v4  ;;  %276 = vadd.xlane.f32.xlu1 %v251_v5 }
 0x136   :  { %346 = vadd.xlane.f32.xlu0 %v322_v6  ;;  %332 = vadd.xlane.f32.xlu1 %v315_v7 }
 0x13a   :  { %348 = vadd.xlane.f32.xlu1 %v323_v8  ;;  %260 = vadd.xlane.f32.xlu0 %v243_v9 }
 0x13e   :  { %270 = vadd.xlane.f32.xlu0 %v248_v10  ;;  %272 = vadd.xlane.f32.xlu1 %v249_v11 }
 0x142   :  { %286 = vadd.xlane.f32.xlu0 %v256_v12  ;;  %288 = vadd.xlane.f32.xlu1 %v257_v13 }
 0x146   :  { %342 = vadd.xlane.f32.xlu0 %v320_v14  ;;  %344 = vadd.xlane.f32.xlu1 %v321_v15 }
 0x14a   :  { %266 = vadd.xlane.f32.xlu0 %v246_v16  ;;  %268 = vadd.xlane.f32.xlu1 %v247_v17 }
 0x14e   :  { %282 = vadd.xlane.f32.xlu0 %v254_v18  ;;  %284 = vadd.xlane.f32.xlu1 %v255_v19 }
 0x152   :  { %338 = vadd.xlane.f32.xlu0 %v318_v20  ;;  %340 = vadd.xlane.f32.xlu1 %v319_v21 }
 0x156   :  { %354 = vadd.xlane.f32.xlu0 %v326_v22  ;;  %356 = vadd.xlane.f32.xlu1 %v327_v23 }
 0x15a   :  { %358 = vadd.xlane.f32.xlu0 %v328_v24  ;;  %360 = vadd.xlane.f32.xlu1 %v329_v25 }
 0x15b   :  { %707 = shalt.err (!%p704_p6)
}
 0x15c   :  { %s708_s30 = scalar_lea.hbm %s987_s4, 1024 }
 0x15d   :  { %p709_p7 = scmp.ne.s32.totalorder %s987_s4, %s708_s30  ;;  %p712_p8 = scmp.lt.u32.totalorder %s708_s30, %s987_s4 }
 0x15f   :  { %p714_p9 = pnand %p712_p8, %p709_p7 }
 0x161   :  { %717 = shalt.err (!%p714_p9)
}
 0x162   :  { %469 = dma.vmem_to_hbm [thread:$0]  %s464_s3, 1024, %s987_s4, [#allocation4], %s728_s0, %s728_s0, %s729_s21   ;;  %vm290_vm0 = vcmask 7168  }
 0x1ab   :  { %v279_v26 = vpop.xlane.xlu0 %278  ;;  %v263_v27 = vpop.xlane.xlu1 %262 }
 0x1ac   :  { %301 = vst.msk [vmem:[%s988_s5 + $0x50] sm:$0xff] %vm290_vm0, %v279_v26  ;;  %293 = vst.msk [vmem:[%s988_s5 + $0x10] sm:$0xff] %vm290_vm0, %v263_v27 }
 0x1af   :  { %v335_v28 = vpop.xlane.xlu0 %334  ;;  %v265_v29 = vpop.xlane.xlu1 %264 }
 0x1b0   :  { %364 = vst.msk [vmem:[%s989_s6 + $0x10] sm:$0xff] %vm290_vm0, %v335_v28  ;;  %294 = vst.msk [vmem:[%s988_s5 + $0x18] sm:$0xff] %vm290_vm0, %v265_v29 }
 0x1b3   :  { %v351_v30 = vpop.xlane.xlu0 %350  ;;  %v281_v31 = vpop.xlane.xlu1 %280 }
 0x1b4   :  { %372 = vst.msk [vmem:[%s989_s6 + $0x50] sm:$0xff] %vm290_vm0, %v351_v30  ;;  %302 = vst.msk [vmem:[%s988_s5 + $0x58] sm:$0xff] %vm290_vm0, %v281_v31 }
 0x1b7   :  { %v259_v32 = vpop.xlane.xlu0 %258  ;;  %v337_v33 = vpop.xlane.xlu1 %336 }
 0x1b8   :  { %291 = vst.msk [vmem:[%s988_s5] sm:$0xff] %vm290_vm0, %v259_v32  ;;  %365 = vst.msk [vmem:[%s989_s6 + $0x18] sm:$0xff] %vm290_vm0, %v337_v33 }
 0x1bb   :  { %v275_v34 = vpop.xlane.xlu0 %274  ;;  %v353_v35 = vpop.xlane.xlu1 %352 }
 0x1bc   :  { %299 = vst.msk [vmem:[%s988_s5 + $0x40] sm:$0xff] %vm290_vm0, %v275_v34  ;;  %373 = vst.msk [vmem:[%s989_s6 + $0x58] sm:$0xff] %vm290_vm0, %v353_v35 }
 0x1bf   :  { %v331_v36 = vpop.xlane.xlu0 %330  ;;  %v277_v37 = vpop.xlane.xlu1 %276 }
 0x1c0   :  { %362 = vst.msk [vmem:[%s989_s6] sm:$0xff] %vm290_vm0, %v331_v36  ;;  %300 = vst.msk [vmem:[%s988_s5 + $0x48] sm:$0xff] %vm290_vm0, %v277_v37 }
 0x1c3   :  { %v347_v38 = vpop.xlane.xlu0 %346  ;;  %v333_v39 = vpop.xlane.xlu1 %332 }
 0x1c4   :  { %370 = vst.msk [vmem:[%s989_s6 + $0x40] sm:$0xff] %vm290_vm0, %v347_v38  ;;  %363 = vst.msk [vmem:[%s989_s6 + $0x8] sm:$0xff] %vm290_vm0, %v333_v39 }
 0x1c7   :  { %v349_v40 = vpop.xlane.xlu1 %348  ;;  %v261_v41 = vpop.xlane.xlu0 %260 }
 0x1c8   :  { %371 = vst.msk [vmem:[%s989_s6 + $0x48] sm:$0xff] %vm290_vm0, %v349_v40  ;;  %292 = vst.msk [vmem:[%s988_s5 + $0x8] sm:$0xff] %vm290_vm0, %v261_v41 }
 0x1cb   :  { %v271_v42 = vpop.xlane.xlu0 %270  ;;  %v273_v43 = vpop.xlane.xlu1 %272 }
 0x1cc   :  { %297 = vst.msk [vmem:[%s988_s5 + $0x30] sm:$0xff] %vm290_vm0, %v271_v42  ;;  %298 = vst.msk [vmem:[%s988_s5 + $0x38] sm:$0xff] %vm290_vm0, %v273_v43 }
 0x1cf   :  { %v287_v44 = vpop.xlane.xlu0 %286  ;;  %v289_v45 = vpop.xlane.xlu1 %288 }
 0x1d0   :  { %305 = vst.msk [vmem:[%s988_s5 + $0x70] sm:$0xff] %vm290_vm0, %v287_v44  ;;  %306 = vst.msk [vmem:[%s988_s5 + $0x78] sm:$0xff] %vm290_vm0, %v289_v45 }
 0x1d3   :  { %v343_v46 = vpop.xlane.xlu0 %342  ;;  %v345_v47 = vpop.xlane.xlu1 %344 }
 0x1d4   :  { %368 = vst.msk [vmem:[%s989_s6 + $0x30] sm:$0xff] %vm290_vm0, %v343_v46  ;;  %369 = vst.msk [vmem:[%s989_s6 + $0x38] sm:$0xff] %vm290_vm0, %v345_v47 }
 0x1d7   :  { %v267_v48 = vpop.xlane.xlu0 %266  ;;  %v269_v49 = vpop.xlane.xlu1 %268 }
 0x1d8   :  { %295 = vst.msk [vmem:[%s988_s5 + $0x20] sm:$0xff] %vm290_vm0, %v267_v48  ;;  %296 = vst.msk [vmem:[%s988_s5 + $0x28] sm:$0xff] %vm290_vm0, %v269_v49 }
 0x1db   :  { %v283_v50 = vpop.xlane.xlu0 %282  ;;  %v285_v51 = vpop.xlane.xlu1 %284 }
 0x1dc   :  { %303 = vst.msk [vmem:[%s988_s5 + $0x60] sm:$0xff] %vm290_vm0, %v283_v50  ;;  %304 = vst.msk [vmem:[%s988_s5 + $0x68] sm:$0xff] %vm290_vm0, %v285_v51 }
 0x1df   :  { %v339_v52 = vpop.xlane.xlu0 %338  ;;  %v341_v53 = vpop.xlane.xlu1 %340 }
 0x1e0   :  { %366 = vst.msk [vmem:[%s989_s6 + $0x20] sm:$0xff] %vm290_vm0, %v339_v52  ;;  %367 = vst.msk [vmem:[%s989_s6 + $0x28] sm:$0xff] %vm290_vm0, %v341_v53 }
 0x1e3   :  { %v355_v54 = vpop.xlane.xlu0 %354  ;;  %v357_v55 = vpop.xlane.xlu1 %356 }
 0x1e4   :  { %374 = vst.msk [vmem:[%s989_s6 + $0x60] sm:$0xff] %vm290_vm0, %v355_v54  ;;  %375 = vst.msk [vmem:[%s989_s6 + $0x68] sm:$0xff] %vm290_vm0, %v357_v55 }
 0x1e7   :  { %v359_v56 = vpop.xlane.xlu0 %358  ;;  %v361_v57 = vpop.xlane.xlu1 %360 }
 0x1e8   :  { %376 = vst.msk [vmem:[%s989_s6 + $0x70] sm:$0xff] %vm290_vm0, %v359_v56  ;;  %377 = vst.msk [vmem:[%s989_s6 + $0x78] sm:$0xff] %vm290_vm0, %v361_v57 }
 0x1e9   :  { %722 = dma.done.wait [#allocation4], 1024  }
 0x1ea   :  { %723 = vsyncadd [#allocation4], 4294966272 }
 0x1eb   :  { %481 = vsyncpa [#allocation3], 1 }
 0x1ec   :  { %482 = vsyncpa [#allocation6], 1 }
 0x1ed   :  { %483 = vsyncpa [#allocation4], 1 }

</bundles_post_ra>
